<compile_context>
chip_gen: v6e
topology: v6e:2x2x1
jax: 0.10.0
libtpu: 0.0.40
codegen_flags: <defaults>
</compile_context>

<pallas_src>
import functools

import jax
import jax.numpy as jnp
import numpy as np
from jax.experimental import pallas as pl
from jax.experimental.pallas import tpu as pltpu


# ------------------------------------------------------------------ parameters

def spline_grid_from_range(spline_size, range_=2, round_to=1e-06):
    # Exactly the Python-float expression used in the PyTorch __init__.
    return range_ / (spline_size // 2) // round_to * round_to


def softshrink(x, lambd=0.5):
    return jnp.where(x > lambd, x - lambd, jnp.where(x < -lambd, x + lambd, 0.0))


def make_bspline_params(num_activations, size=5, spline_range=4, dtype=jnp.float32):
    """Deterministic parameter init replicating BSplineActivation.__init__."""
    grid = float(spline_grid_from_range(size, spline_range))
    grid_arange = jnp.arange(-(size // 2), size // 2 + 1, dtype=dtype) * grid
    grid_tensor = jnp.broadcast_to(grid_arange, (num_activations, size))
    half = num_activations // 2
    coefficients = jnp.concatenate(
        [jnp.abs(grid_tensor[:half, :]), softshrink(grid_tensor[half:, :], 0.5)],
        axis=0,
    ).astype(dtype)
    return coefficients, grid  # coefficients: (A, size); grid: python float


def pack_bspline_coefficients(coefficients, size):
    """Pack (A, size) coefficients into an f32 (size, A//128, 128) slab aligned with the
    kernel's x layout.  Call ONCE per parameter update, NOT per forward (hoisted per review)."""
    a = coefficients.shape[0]
    assert coefficients.shape == (a, size)
    assert a % 128 == 0, "A = C*H*W must be a multiple of 128"
    return jnp.transpose(coefficients.astype(jnp.float32)).reshape(size, a // 128, 128)


# ------------------------------------------------------------------ Pallas kernel

def bspline_kernel(x_ref, c_ref, o_ref, *, inv_grid, size):
    """x_ref/o_ref: (BN, TR, 128) activation slab; c_ref: (size, TR, 128) matching coeffs."""
    half = size // 2
    x = x_ref[...].astype(jnp.float32)          # compute in f32 (v5e VPU has no bf16)
    # Clamp in KNOT units so fl always lies in [-half, half-1] and the select chain below
    # covers it (clamping x then multiplying by inv_grid could round fl to -(half+1)).
    t = jnp.clip(x * inv_grid, float(-half), float(half - 1))
    fl = jnp.floor(t)
    frac = t - fl                               # distance to the left knot, in [0, 1)

    # Chained selects over the statically-unrolled knot intervals.  Index the coeff Ref per
    # knot (exactly `size` row loads; no full-block materialization, no add-through-zero).
    c_left = c_ref[0][None]                     # (1, TR, 128); broadcasts on first select
    c_right = c_ref[1][None]
    for j in range(1, size - 1):
        m = fl >= float(j - half)
        c_left = jnp.where(m, c_ref[j][None], c_left)
        c_right = jnp.where(m, c_ref[j + 1][None], c_right)

    out = c_left + frac * (c_right - c_left)
    o_ref[...] = out.astype(o_ref.dtype)


# ------------------------------------------------------------------ tiling

_MAX_ROW_TILE = 1024            # ~2.5 MiB f32 coeff block/step; near the HBM-roofline sweet spot
_MIN_STEP_BYTES = 512 * 1024    # fold batch elements until one step moves at least this much
_MAX_X_BLOCK_BYTES = 2 * 1024 * 1024


def _choose_tiles(n, rows_total, x_itemsize):
    """Pick (bn, tr): batch elements and (A//128)-rows per grid step."""
    row_bytes = 128 * x_itemsize
    # Row tile: largest multiple of 8 dividing rows_total (<= _MAX_ROW_TILE); otherwise the
    # full extent (a block equal to the full array dim is legal even if not a multiple of 8).
    tr = None
    for d in range(8, min(_MAX_ROW_TILE, rows_total) + 1, 8):
        if rows_total % d == 0:
            tr = d
    if tr is None:
        tr = rows_total  # TODO(synk): pad rows_total for huge prime-ish A to bound VMEM use.
    # Batch fold: if a one-batch block is small, group batch elements per grid step so the
    # ~0.35 us per-step overhead is amortized (fixes the degenerate small-tile path).
    bn = 1
    if tr * row_bytes < _MIN_STEP_BYTES:
        for d in range(2, n + 1):
            if n % d == 0 and d * tr * row_bytes <= _MAX_X_BLOCK_BYTES:
                bn = d
    return bn, tr


# ------------------------------------------------------------------ wrapper

def bspline_activation(x_nchw, coeff_slab, grid, size):
    """Forward of BSplineActivation(mode='conv') for a 4D NCHW input.

    coeff_slab: output of pack_bspline_coefficients (pre-packed, cached across calls).
    Returns (N, C*H*W, 1, 1) in the input dtype (conv mode does not reshape back).
    """
    n, c, h, w = x_nchw.shape
    a = c * h * w
    size_, rows_total, lanes = coeff_slab.shape
    assert size_ == size and lanes == 128 and rows_total * 128 == a
    # TODO(synk): pad / mask a tail block to support A not divisible by 128.

    x3d = x_nchw.reshape(n, rows_total, 128)          # keep native dtype; upcast in-kernel
    bn, tr = _choose_tiles(n, rows_total, x3d.dtype.itemsize)
    gi_steps = rows_total // tr
    ni_steps = n // bn

    kernel = functools.partial(bspline_kernel, inv_grid=1.0 / float(grid), size=size)

    out3d = pl.pallas_call(
        kernel,
        out_shape=jax.ShapeDtypeStruct((n, rows_total, 128), x3d.dtype),
        grid=(gi_steps, ni_steps),  # batch axis innermost -> coeff block index unchanged
        in_specs=[
            pl.BlockSpec((bn, tr, 128), lambda gi, ni: (ni, gi, 0)),
            pl.BlockSpec((size, tr, 128), lambda gi, ni: (0, gi, 0)),
        ],
        out_specs=pl.BlockSpec((bn, tr, 128), lambda gi, ni: (ni, gi, 0)),
        compiler_params=pltpu.CompilerParams(
            # Batch axis "arbitrary": on v7x megacore this forces the core split along the
            # row axis, preserving coeff-slab residency per core; no-op on v5e/v6e (1 TC).
            dimension_semantics=("parallel", "arbitrary")
        ),
    )(x3d, coeff_slab)

    return out3d.reshape(n, a, 1, 1)


# ------------------------------------------------------------------ reference (pure JAX)

def bspline_reference(x_nchw, coefficients, grid, size):
    n = x_nchw.shape[0]
    a = coefficients.shape[0]
    x2d = x_nchw.reshape(n, a).astype(jnp.float32)
    coeff_vect = coefficients.reshape(-1)
    zero_knot = jnp.arange(a) * size + size // 2
    half = size // 2
    x_clamped = jnp.clip(x2d, -(grid * half), grid * (half - 1))
    floored = jnp.floor(x_clamped / grid)
    frac = x_clamped / grid - floored
    idx = (zero_knot[None, :] + floored).astype(jnp.int32)
    out = jnp.take(coeff_vect, idx + 1) * frac + jnp.take(coeff_vect, idx) * (1.0 - frac)
    return out.reshape(n, a, 1, 1)


# ------------------------------------------------------------------ main

if __name__ == "__main__":
    SIZE = 5          # spline size (odd)
    N, C, H, W = 2, 4, 16, 16
    NUM_ACTIVATIONS = C * H * W   # conv-mode forward requires input.view(N,-1).size(1) == A

    coefficients, grid = make_bspline_params(NUM_ACTIVATIONS, size=SIZE, spline_range=4)
    # Pack the coeff table once (cached across forward calls; not on the per-call path).
    coeff_slab = jax.block_until_ready(pack_bspline_coefficients(coefficients, SIZE))

    key = jax.random.PRNGKey(0)
    x = jax.random.normal(key, (N, C, H, W), dtype=jnp.float32) * 3.0  # exercise clamp region

    out = bspline_activation(x, coeff_slab, grid, SIZE)
    out = jax.block_until_ready(out)

    ref = bspline_reference(x, coefficients, grid, SIZE)
    np.testing.assert_allclose(np.asarray(out), np.asarray(ref), rtol=1e-6, atol=1e-6)

    assert out.shape == (N, NUM_ACTIVATIONS, 1, 1)
    print("KERNEL_OK")
</pallas_src>

<mosaic_0001>
module attributes {stable_mosaic.version = 11 : i64} {
  func.func @bspline_kernel(%arg0: i32, %arg1: i32, %arg2: memref<2x8x128xf32, #tpu.memory_space<vmem>>, %arg3: memref<5x8x128xf32, #tpu.memory_space<vmem>>, %arg4: memref<2x8x128xf32, #tpu.memory_space<vmem>>) attributes {dimension_semantics = [#tpu.dimension_semantics<parallel>, #tpu.dimension_semantics<arbitrary>], iteration_bounds = array<i64: 1, 1>, scalar_prefetch = 0 : i64, scratch_operands = 0 : i64, tpu.core_type = #tpu.core_type<tc>, window_params = [{transform_indices = @transform_0, window_bounds = array<i64: 2, 8, 128>}, {transform_indices = @transform_1, window_bounds = array<i64: 5, 8, 128>}, {transform_indices = @transform_2, window_bounds = array<i64: 2, 8, 128>}]} {
    %c0 = arith.constant 0 : index
    %c0_0 = arith.constant 0 : index
    %c0_1 = arith.constant 0 : index
    %0 = vector.load %arg2[%c0, %c0_0, %c0_1] : memref<2x8x128xf32, #tpu.memory_space<vmem>>, vector<2x8x128xf32>
    %cst = arith.constant 5.000000e-01 : f32
    %1 = vector.broadcast %cst : f32 to vector<2x8x128xf32>
    %2 = arith.mulf %0, %1 : vector<2x8x128xf32>
    %cst_2 = arith.constant -2.000000e+00 : f32
    %cst_3 = arith.constant 1.000000e+00 : f32
    %3 = vector.broadcast %cst_2 : f32 to vector<2x8x128xf32>
    %4 = arith.maximumf %3, %2 : vector<2x8x128xf32>
    %5 = vector.broadcast %cst_3 : f32 to vector<2x8x128xf32>
    %6 = arith.minimumf %5, %4 : vector<2x8x128xf32>
    %7 = math.floor %6 : vector<2x8x128xf32>
    %8 = arith.subf %6, %7 : vector<2x8x128xf32>
    %c0_4 = arith.constant 0 : index
    %c0_5 = arith.constant 0 : index
    %c0_6 = arith.constant 0 : index
    %9 = vector.load %arg3[%c0_4, %c0_5, %c0_6] : memref<5x8x128xf32, #tpu.memory_space<vmem>>, vector<1x8x128xf32>
    %10 = vector.shape_cast %9 : vector<1x8x128xf32> to vector<8x128xf32>
    %11 = vector.shape_cast %10 : vector<8x128xf32> to vector<1x8x128xf32>
    %c1 = arith.constant 1 : index
    %c0_7 = arith.constant 0 : index
    %c0_8 = arith.constant 0 : index
    %12 = vector.load %arg3[%c1, %c0_7, %c0_8] : memref<5x8x128xf32, #tpu.memory_space<vmem>>, vector<1x8x128xf32>
    %13 = vector.shape_cast %12 : vector<1x8x128xf32> to vector<8x128xf32>
    %14 = vector.shape_cast %13 : vector<8x128xf32> to vector<1x8x128xf32>
    %cst_9 = arith.constant -1.000000e+00 : f32
    %15 = vector.broadcast %cst_9 : f32 to vector<2x8x128xf32>
    %16 = arith.cmpf oge, %7, %15 : vector<2x8x128xf32>
    %c1_10 = arith.constant 1 : index
    %c0_11 = arith.constant 0 : index
    %c0_12 = arith.constant 0 : index
    %17 = vector.load %arg3[%c1_10, %c0_11, %c0_12] : memref<5x8x128xf32, #tpu.memory_space<vmem>>, vector<1x8x128xf32>
    %18 = vector.shape_cast %17 : vector<1x8x128xf32> to vector<8x128xf32>
    %19 = vector.shape_cast %18 : vector<8x128xf32> to vector<1x8x128xf32>
    %20 = vector.shape_cast %19 : vector<1x8x128xf32> to vector<1x8x128xf32>
    %21 = vector.broadcast %20 : vector<1x8x128xf32> to vector<2x8x128xf32>
    %22 = vector.shape_cast %11 : vector<1x8x128xf32> to vector<1x8x128xf32>
    %23 = vector.broadcast %22 : vector<1x8x128xf32> to vector<2x8x128xf32>
    %24 = arith.select %16, %21, %23 : vector<2x8x128xi1>, vector<2x8x128xf32>
    %c2 = arith.constant 2 : index
    %c0_13 = arith.constant 0 : index
    %c0_14 = arith.constant 0 : index
    %25 = vector.load %arg3[%c2, %c0_13, %c0_14] : memref<5x8x128xf32, #tpu.memory_space<vmem>>, vector<1x8x128xf32>
    %26 = vector.shape_cast %25 : vector<1x8x128xf32> to vector<8x128xf32>
    %27 = vector.shape_cast %26 : vector<8x128xf32> to vector<1x8x128xf32>
    %28 = vector.shape_cast %27 : vector<1x8x128xf32> to vector<1x8x128xf32>
    %29 = vector.broadcast %28 : vector<1x8x128xf32> to vector<2x8x128xf32>
    %30 = vector.shape_cast %14 : vector<1x8x128xf32> to vector<1x8x128xf32>
    %31 = vector.broadcast %30 : vector<1x8x128xf32> to vector<2x8x128xf32>
    %32 = arith.select %16, %29, %31 : vector<2x8x128xi1>, vector<2x8x128xf32>
    %cst_15 = arith.constant 0.000000e+00 : f32
    %33 = vector.broadcast %cst_15 : f32 to vector<2x8x128xf32>
    %34 = arith.cmpf oge, %7, %33 : vector<2x8x128xf32>
    %c2_16 = arith.constant 2 : index
    %c0_17 = arith.constant 0 : index
    %c0_18 = arith.constant 0 : index
    %35 = vector.load %arg3[%c2_16, %c0_17, %c0_18] : memref<5x8x128xf32, #tpu.memory_space<vmem>>, vector<1x8x128xf32>
    %36 = vector.shape_cast %35 : vector<1x8x128xf32> to vector<8x128xf32>
    %37 = vector.shape_cast %36 : vector<8x128xf32> to vector<1x8x128xf32>
    %38 = vector.shape_cast %37 : vector<1x8x128xf32> to vector<1x8x128xf32>
    %39 = vector.broadcast %38 : vector<1x8x128xf32> to vector<2x8x128xf32>
    %40 = arith.select %34, %39, %24 : vector<2x8x128xi1>, vector<2x8x128xf32>
    %c3 = arith.constant 3 : index
    %c0_19 = arith.constant 0 : index
    %c0_20 = arith.constant 0 : index
    %41 = vector.load %arg3[%c3, %c0_19, %c0_20] : memref<5x8x128xf32, #tpu.memory_space<vmem>>, vector<1x8x128xf32>
    %42 = vector.shape_cast %41 : vector<1x8x128xf32> to vector<8x128xf32>
    %43 = vector.shape_cast %42 : vector<8x128xf32> to vector<1x8x128xf32>
    %44 = vector.shape_cast %43 : vector<1x8x128xf32> to vector<1x8x128xf32>
    %45 = vector.broadcast %44 : vector<1x8x128xf32> to vector<2x8x128xf32>
    %46 = arith.select %34, %45, %32 : vector<2x8x128xi1>, vector<2x8x128xf32>
    %cst_21 = arith.constant 1.000000e+00 : f32
    %47 = vector.broadcast %cst_21 : f32 to vector<2x8x128xf32>
    %48 = arith.cmpf oge, %7, %47 : vector<2x8x128xf32>
    %c3_22 = arith.constant 3 : index
    %c0_23 = arith.constant 0 : index
    %c0_24 = arith.constant 0 : index
    %49 = vector.load %arg3[%c3_22, %c0_23, %c0_24] : memref<5x8x128xf32, #tpu.memory_space<vmem>>, vector<1x8x128xf32>
    %50 = vector.shape_cast %49 : vector<1x8x128xf32> to vector<8x128xf32>
    %51 = vector.shape_cast %50 : vector<8x128xf32> to vector<1x8x128xf32>
    %52 = vector.shape_cast %51 : vector<1x8x128xf32> to vector<1x8x128xf32>
    %53 = vector.broadcast %52 : vector<1x8x128xf32> to vector<2x8x128xf32>
    %54 = arith.select %48, %53, %40 : vector<2x8x128xi1>, vector<2x8x128xf32>
    %c4 = arith.constant 4 : index
    %c0_25 = arith.constant 0 : index
    %c0_26 = arith.constant 0 : index
    %55 = vector.load %arg3[%c4, %c0_25, %c0_26] : memref<5x8x128xf32, #tpu.memory_space<vmem>>, vector<1x8x128xf32>
    %56 = vector.shape_cast %55 : vector<1x8x128xf32> to vector<8x128xf32>
    %57 = vector.shape_cast %56 : vector<8x128xf32> to vector<1x8x128xf32>
    %58 = vector.shape_cast %57 : vector<1x8x128xf32> to vector<1x8x128xf32>
    %59 = vector.broadcast %58 : vector<1x8x128xf32> to vector<2x8x128xf32>
    %60 = arith.select %48, %59, %46 : vector<2x8x128xi1>, vector<2x8x128xf32>
    %61 = arith.subf %60, %54 : vector<2x8x128xf32>
    %62 = arith.mulf %8, %61 : vector<2x8x128xf32>
    %63 = arith.addf %54, %62 : vector<2x8x128xf32>
    %c0_27 = arith.constant 0 : index
    %c0_28 = arith.constant 0 : index
    %c0_29 = arith.constant 0 : index
    %64 = vector.load %arg4[%c0_27, %c0_28, %c0_29] : memref<2x8x128xf32, #tpu.memory_space<vmem>>, vector<2x8x128xf32>
    tpu.vector_store %arg4[%c0_27, %c0_28, %c0_29], %63 {strides = array<i32>} : memref<2x8x128xf32, #tpu.memory_space<vmem>>, vector<2x8x128xf32>,
    return
  }
  func.func @transform_0(%arg0: i32, %arg1: i32) -> (i32, i32, i32) {
    %c0_i32 = arith.constant 0 : i32
    %c0_i32_0 = arith.constant 0 : i32
    return %arg1, %arg0, %c0_i32 : i32, i32, i32
  }
  func.func @transform_1(%arg0: i32, %arg1: i32) -> (i32, i32, i32) {
    %c0_i32 = arith.constant 0 : i32
    %c0_i32_0 = arith.constant 0 : i32
    %c0_i32_1 = arith.constant 0 : i32
    return %c0_i32, %arg0, %c0_i32_0 : i32, i32, i32
  }
  func.func @transform_2(%arg0: i32, %arg1: i32) -> (i32, i32, i32) {
    %c0_i32 = arith.constant 0 : i32
    %c0_i32_0 = arith.constant 0 : i32
    return %arg1, %arg0, %c0_i32 : i32, i32, i32
  }
}

</mosaic_0001>

<bundles_post_ra>
// kernel: tpu_custom_call.1
= control target key start
LH: loop header
LB: loop body
LE: loop exit
PB: predicated region body
PF: predicated region fallthrough
CT: control target
= control target key end

     0   :  { %7 = vsyncpa [#allocation3], 0  ;;  %s214_s0 = inlined_call_operand.hbm [shape: f32[2,8,128], index: 0, kind: input, shape index: {}]   ;;  %s215_s1 = inlined_call_operand.hbm [shape: f32[5,8,128], index: 1, kind: input, shape index: {}]   ;;  %s216_s2 = inlined_call_operand.hbm [shape: f32[2,8,128], index: 2, kind: output, shape index: {}]  }
   0x1   :  { %8 = vsyncpa [#allocation6], 0 }
   0x2   :  { %9 = vsyncpa [#allocation4], 0  ;;  %s176_s9 = smov [#allocation2]  }
   0x3   :  { %s15_s10 = sshll.u32 %s176_s9, 4  ;;  %s16_s10 = int_to_ptr.vmem [resolvable:$true] %s15_s10 }
   0x4   :  { %s118_s11 = scalar_lea.vmem %s16_s10, 256  ;;  %p123_p1 = scmp.lt.s32.totalorder %s16_s10, %s16_s10 }
   0x5   :  { %p119_p0 = scmp.ne.s32.totalorder %s16_s10, %s118_s11  ;;  %p124_p2 = scmp.lt.s32.totalorder %s118_s11, %s118_s11 }
   0x7   :  { %p125_p3 = por %p124_p2, %p123_p1 }
   0x9   :  { %p126_p4 = pnand %p125_p3, %p119_p0 }
   0xb   :  { %129 = shalt.err (!%p126_p4)
}
   0xc   :  { %s177_s12 = smov 128   ;;  %s178_s13 = smov 8  }
   0xd   :  { %21 = dma.hbm_to_vmem [thread:$0]  %s214_s0, 256, %s16_s10, [#allocation3], %s177_s12, %s177_s12, %s178_s13  }
   0xe   :  { %s179_s16 = smov [#allocation5]  }
   0xf   :  { %s27_s17 = sshll.u32 %s179_s16, 4  ;;  %s28_s17 = int_to_ptr.vmem [resolvable:$true] %s27_s17 }
  0x10   :  { %s138_s18 = scalar_lea.vmem %s28_s17, 640  ;;  %p143_p6 = scmp.lt.s32.totalorder %s28_s17, %s28_s17 }
  0x11   :  { %p139_p5 = scmp.ne.s32.totalorder %s28_s17, %s138_s18  ;;  %p144_p7 = scmp.lt.s32.totalorder %s138_s18, %s138_s18 }
  0x13   :  { %p145_p8 = por %p144_p7, %p143_p6 }
  0x15   :  { %p146_p9 = pnand %p145_p8, %p139_p5 }
  0x17   :  { %149 = shalt.err (!%p146_p9)
}
  0x18   :  { %33 = dma.hbm_to_vmem [thread:$0]  %s215_s1, 640, %s28_s17, [#allocation6], %s177_s12, %s177_s12, %s178_s13  }
  0x19   :  { %170 = dma.done.wait [#allocation3], 256  }
  0x1a   :  { %171 = vsyncadd [#allocation3], 4294967040 }
  0x1b   :  { %172 = dma.done.wait [#allocation6], 640  }
  0x1c   :  { %173 = vsyncadd [#allocation6], 4294966656  ;;  %v40_v0 = vld [vmem:[#allocation2] sm:$0xff]  ;;  %v41_v2 = vld [vmem:[#allocation2 + $0x8] sm:$0xff]  ;;  %s180_s0 = smov [#allocation7]  }
  0x1d   :  { %v42_v1 = vmul.f32 0.5, %v40_v0  ;;  %v43_v4 = vmul.f32 0.5, %v41_v2  ;;  %v52_v8 = vld [vmem:[#allocation5] sm:$0xff]  ;;  %v54_v9 = vld [vmem:[#allocation5 + $0x8] sm:$0xff]  ;;  %v60_v10 = vld [vmem:[#allocation5 + $0x10] sm:$0xff]  ;;  %s92_s1 = sshll.u32 %s180_s0, 4  ;;  %s93_s1 = int_to_ptr.vmem [resolvable:$true] %s92_s1 }
  0x1e   :  { %v68_v12 = vld [vmem:[#allocation5 + $0x18] sm:$0xff]  ;;  %v76_v13 = vld [vmem:[#allocation5 + $0x20] sm:$0xff]  ;;  %s150_s21 = scalar_lea.vmem %s93_s1, 256  ;;  %p155_p11 = scmp.lt.s32.totalorder %s93_s1, %s93_s1 }
  0x1f   :  { %v44_v3 = vmax.f32 %v42_v1, -2.0  ;;  %v45_v6 = vmax.f32 %v43_v4, -2.0  ;;  %p151_p10 = scmp.ne.s32.totalorder %s93_s1, %s150_s21  ;;  %p156_p12 = scmp.lt.s32.totalorder %s150_s21, %s150_s21 }
  0x21   :  { %v46_v5 = vmin.f32 %v44_v3, 1.0  ;;  %v47_v11 = vmin.f32 %v45_v6, 1.0  ;;  %p157_p13 = por %p156_p12, %p155_p11 }
  0x23   :  { %v48_v7 = vfloor.f32 %v46_v5  ;;  %v49_v16 = vfloor.f32 %v47_v11  ;;  %p158_p0 = pnand %p157_p13, %p151_p10 }
  0x25   :  { %vm55_vm0 = vcmp.ge.f32.partialorder %v48_v7, -1.0  ;;  %vm63_vm1 = vcmp.ge.f32.partialorder %v48_v7, 0.0  ;;  %vm71_vm2 = vcmp.ge.f32.partialorder %v48_v7, 1.0  ;;  %v50_v17 = vsub.f32 %v46_v5, %v48_v7 }
  0x26   :  { %v57_v14 = vsel %vm55_vm0, %v54_v9, %v52_v8  ;;  %v61_v15 = vsel %vm55_vm0, %v60_v10, %v54_v9  ;;  %vm56_vm3 = vcmp.ge.f32.partialorder %v49_v16, -1.0  ;;  %vm64_vm4 = vcmp.ge.f32.partialorder %v49_v16, 0.0 }
  0x27   :  { %v65_v18 = vsel %vm63_vm1, %v60_v10, %v57_v14  ;;  %v69_v19 = vsel %vm63_vm1, %v68_v12, %v61_v15  ;;  %v58_v23 = vsel %vm56_vm3, %v54_v9, %v52_v8  ;;  %v62_v24 = vsel %vm56_vm3, %v60_v10, %v54_v9 }
  0x28   :  { %v73_v20 = vsel %vm71_vm2, %v68_v12, %v65_v18  ;;  %v77_v21 = vsel %vm71_vm2, %v76_v13, %v69_v19  ;;  %v51_v25 = vsub.f32 %v47_v11, %v49_v16  ;;  %v66_v26 = vsel %vm64_vm4, %v60_v10, %v58_v23 }
  0x29   :  { %v79_v22 = vsub.f32 %v77_v21, %v73_v20  ;;  %v70_v27 = vsel %vm64_vm4, %v68_v12, %v62_v24  ;;  %vm72_vm5 = vcmp.ge.f32.partialorder %v49_v16, 1.0 }
  0x2a   :  { %v74_v29 = vsel %vm72_vm5, %v68_v12, %v66_v26  ;;  %v78_v30 = vsel %vm72_vm5, %v76_v13, %v70_v27 }
  0x2b   :  { %v81_v28 = vmul.f32 %v79_v22, %v50_v17  ;;  %v80_v31 = vsub.f32 %v78_v30, %v74_v29 }
  0x2d   :  { %v83_v32 = vadd.f32 %v81_v28, %v73_v20  ;;  %v82_v33 = vmul.f32 %v80_v31, %v51_v25 }
  0x2f   :  { %85 = vst [vmem:[#allocation7] sm:$0xff] %v83_v32  ;;  %v84_v34 = vadd.f32 %v82_v33, %v74_v29 }
  0x31   :  { %86 = vst [vmem:[#allocation7 + $0x8] sm:$0xff] %v84_v34 }
  0x32   :  { %161 = shalt.err (!%p158_p0)
}
  0x33   :  { %98 = dma.vmem_to_hbm [thread:$0]  %s93_s1, 256, %s216_s2, [#allocation4], %s177_s12, %s177_s12, %s178_s13  }
  0x34   :  { %174 = dma.done.wait [#allocation4], 256  }
  0x35   :  { %175 = vsyncadd [#allocation4], 4294967040 }
  0x36   :  { %102 = vsyncpa [#allocation3], 1 }
  0x37   :  { %103 = vsyncpa [#allocation6], 1 }
  0x38   :  { %104 = vsyncpa [#allocation4], 1 }

</bundles_post_ra>
